<compile_context>
chip_gen: v6e
topology: v6e:2x2x1
jax: 0.10.0
libtpu: 0.0.40
codegen_flags: <defaults>
</compile_context>

<pallas_src>
import jax
import jax.numpy as jnp
import numpy as np
from jax import lax
from jax.experimental import pallas as pl
from jax.experimental.pallas import tpu as pltpu

_MASK_VALUE = float(np.finfo(np.float32).min) / 10000.0
_LN_EPS = 1e-5


def _layer_norm(x, gamma, beta, eps):
    # x: (L, C) f32; gamma/beta: (1, C) f32
    mu = jnp.mean(x, axis=-1, keepdims=True)
    xc = x - mu
    var = jnp.mean(xc * xc, axis=-1, keepdims=True)
    return xc * lax.rsqrt(var + eps) * gamma + beta


# ----------------------------------------------------------------------------
# Kernel 1: LayerNorm + pair-bias projection
# ----------------------------------------------------------------------------
def _make_pair_bias_kernel(eps, compute_dtype):
    def kernel(x_ref, g_ref, b_ref, wp_ref, bias_ref):
        y = _layer_norm(x_ref[0, 0].astype(jnp.float32), g_ref[...],
                        b_ref[...], eps)                                # (L, C)
        bias_ref[0, 0] = jnp.dot(y.astype(compute_dtype), wp_ref[...],
                                 preferred_element_type=jnp.float32)    # (L, HP)
    return kernel


# ----------------------------------------------------------------------------
# Kernel 2: gated multi-head attention (+ optional inception conv)
# ----------------------------------------------------------------------------
def _make_attention_kernel(H, KD, VD, DK, DV, KMAX, use_inc, gating, eps,
                           compute_dtype):
    PAD = KMAX // 2
    CKV = 2 * KD + VD     # lanes covered by the q|k|v depthwise conv

    def dwconv(x, w, b):
        # x: (L, C) f32, w: (KMAX, C) f32 taps, b: (1, C) f32 bias.
        # Depthwise "same" conv along L with zero padding — identical to
        # Conv1d(groups=C, padding=k//2) with taps centered/zero-padded to
        # KMAX.  Pure VPU shift-and-MAC (O(L*C*KMAX)); no MXU work.
        L, C = x.shape
        if PAD > 0:
            zpad = jnp.zeros((PAD, C), x.dtype)
            xp = jnp.concatenate([zpad, x, zpad], axis=0)       # (L + 2*PAD, C)
        else:
            xp = x
        acc = xp[0:L, :] * w[0:1, :]
        for j in range(1, KMAX):
            acc = acc + xp[j:j + L, :] * w[j:j + 1, :]
        return acc + b

    def kernel(act_ref, g_ref, be_ref, bias_ref, madd_ref, wqkvg_ref, *rest):
        idx = 0
        if gating:
            bg_ref = rest[idx]; idx += 1
        wo_ref = rest[idx]; bo_ref = rest[idx + 1]; idx += 2
        if use_inc:
            cw_ref = rest[idx]; cb_ref = rest[idx + 1]; idx += 2
        out_ref = rest[idx]

        # LayerNorm of this row (q_data == k_data == normed pair row).
        y = _layer_norm(act_ref[0, 0].astype(jnp.float32),
                        g_ref[...], be_ref[...], eps)           # (L, C) f32
        madd = madd_ref[0, 0]                                   # (1, Lk) f32

        # Single fused whole-width projection: [q*scale | k | v | gate].
        proj = jnp.dot(y.astype(compute_dtype), wqkvg_ref[...],
                       preferred_element_type=jnp.float32)      # (L, CKV[+VD])

        if gating:
            gate = jax.nn.sigmoid(proj[:, CKV:] + bg_ref[...])  # (L, VD) f32
            src = proj[:, :CKV]
        else:
            src = proj
        if use_inc:
            src = dwconv(src, cw_ref[0], cb_ref[0])
        src = src.astype(compute_dtype)

        heads = []
        for h in range(H):
            qh = src[:, h * DK:(h + 1) * DK]                    # (Lq, DK)
            kh = src[:, KD + h * DK:KD + (h + 1) * DK]          # (Lk, DK)
            vh = src[:, 2 * KD + h * DV:2 * KD + (h + 1) * DV]  # (Lk, DV)
            logits = lax.dot_general(qh, kh, (((1,), (1,)), ((), ())),
                                     preferred_element_type=jnp.float32)
            logits = logits + (bias_ref[0, h] + madd)            # (Lq, Lk) f32
            m = jnp.max(logits, axis=-1, keepdims=True)
            e = jnp.exp(logits - m)
            inv = pl.reciprocal(jnp.sum(e, axis=-1, keepdims=True), approx=True)
            oh = jnp.dot(e.astype(compute_dtype), vh,
                         preferred_element_type=jnp.float32)     # (Lq, DV)
            heads.append(oh * inv)        # deferred softmax normalization

        # One lane-dense (Lq, VD) tile, gated, single output matmul + store.
        wa = jnp.concatenate(heads, axis=1)
        if gating:
            wa = wa * gate
        out = jnp.dot(wa.astype(compute_dtype), wo_ref[...],
                      preferred_element_type=jnp.float32) + bo_ref[...]
        out_ref[0, 0] = out.astype(out_ref.dtype)

    return kernel


# ----------------------------------------------------------------------------
# Wrapper (parameter packing / pallas_call setup)
# ----------------------------------------------------------------------------
def triangle_attention_pallas(pair_act, seq_mask, params, *, num_head,
                              gating=True, inp_kernels=None,
                              orientation="per_row",
                              compute_dtype=jnp.float32):
    # TODO(synk): the optional `pair_mask` argument of Attention.forward is not
    # implemented; only the bias + seq_mask masking path is supported.
    assert orientation in ("per_row", "per_column")
    if orientation == "per_column":
        pair_act = jnp.swapaxes(pair_act, 1, 2)

    B, L, L2, C = pair_act.shape
    assert L == L2
    H = num_head

    gamma = params["gamma"].reshape(1, C).astype(jnp.float32)
    beta = params["beta"].reshape(1, C).astype(jnp.float32)

    # ---- stage 1: LayerNorm + pair-bias projection --------------------------
    HP = max(8, ((H + 7) // 8) * 8)          # pad heads to a sublane multiple
    wp = jnp.zeros((C, HP), compute_dtype).at[:, :H].set(
        params["Wp"].astype(compute_dtype))
    bias_raw = pl.pallas_call(
        _make_pair_bias_kernel(_LN_EPS, compute_dtype),
        out_shape=jax.ShapeDtypeStruct((B, L, L, HP), jnp.float32),
        grid_spec=pltpu.PrefetchScalarGridSpec(
            num_scalar_prefetch=0,
            grid=(B, L),
            in_specs=[pl.BlockSpec((1, 1, L, C), lambda b, i: (b, i, 0, 0)),
                      pl.BlockSpec((1, C), lambda b, i: (0, 0)),
                      pl.BlockSpec((1, C), lambda b, i: (0, 0)),
                      pl.BlockSpec((C, HP), lambda b, i: (0, 0))],
            out_specs=pl.BlockSpec((1, 1, L, HP), lambda b, i: (b, i, 0, 0))),
        compiler_params=pltpu.CompilerParams(
            dimension_semantics=("parallel", "parallel")),
    )(pair_act, gamma, beta, wp)
    # bias[b, h, q, k] = proj_pair(LN(pair_act))[b, q, k, h]
    bias = jnp.transpose(bias_raw, (0, 3, 1, 2))      # (B, HP, L, L), cheap XLA

    # ---- stage 2: attention --------------------------------------------------
    Wq, Wk, Wv = params["Wq"], params["Wk"], params["Wv"]
    Wo, bo = params["Wo"], params["bo"]
    KD, VD, OD = Wq.shape[1], Wv.shape[1], Wo.shape[1]
    DK, DV = KD // H, VD // H
    scale = DK ** (-0.5)

    # Fused (and pre-scaled) projection weight [q*scale | k | v | gate].
    parts = [Wq * scale, Wk, Wv] + ([params["Wg"]] if gating else [])
    wqkvg = jnp.concatenate(parts, axis=1).astype(compute_dtype)
    wo = Wo.astype(compute_dtype)
    bo2 = bo.reshape(1, OD).astype(jnp.float32)

    # Head-independent additive key mask (shared by all rows s).
    madd = jnp.where(seq_mask[:, None, None, :], 0.0,
                     _MASK_VALUE).astype(jnp.float32)            # (B, 1, 1, L)

    args = [pair_act, gamma, beta, bias, madd, wqkvg]
    in_specs = [
        pl.BlockSpec((1, 1, L, C), lambda b, s: (b, s, 0, 0)),   # pair row
        pl.BlockSpec((1, C), lambda b, s: (0, 0)),               # LN gamma
        pl.BlockSpec((1, C), lambda b, s: (0, 0)),               # LN beta
        pl.BlockSpec((1, HP, L, L), lambda b, s: (b, 0, 0, 0)),  # pair bias
        pl.BlockSpec((1, 1, 1, L), lambda b, s: (b, 0, 0, 0)),   # additive mask
        pl.BlockSpec((C, wqkvg.shape[1]), lambda b, s: (0, 0)),  # fused W
    ]
    if gating:
        args.append(params["bg"].reshape(1, VD).astype(jnp.float32))
        in_specs.append(pl.BlockSpec((1, VD), lambda b, s: (0, 0)))
    args += [wo, bo2]
    in_specs += [pl.BlockSpec((VD, OD), lambda b, s: (0, 0)),
                 pl.BlockSpec((1, OD), lambda b, s: (0, 0))]

    use_inc = inp_kernels is not None
    if use_inc:
        kernels = list(inp_kernels)
        nk = len(kernels)
        assert (L * H) % nk == 0
        KMAX = max(kernels)
        gn = (L * H) // nk
        # which inception group each flattened (s*H + h) channel belongs to
        group_of = (np.arange(L * H) // gn).reshape(L, H)

        def pack_w(CW):   # (nk, KMAX, d) -> (L, KMAX, H*d), head-major lanes
            g = CW[group_of]                                     # (L, H, KMAX, d)
            return jnp.transpose(g, (0, 2, 1, 3)).reshape(L, KMAX, -1)

        def pack_b(CB):   # (nk, d) -> (L, 1, H*d)
            return CB[group_of].reshape(L, 1, -1)

        # q-scale is folded into Wq (conv input is pre-scaled) => scale q bias.
        cw = jnp.concatenate([pack_w(params["CWq"]), pack_w(params["CWk"]),
                              pack_w(params["CWv"])], axis=-1)   # (L, KMAX, 2KD+VD)
        cb = jnp.concatenate([pack_b(params["CBq"]) * scale,
                              pack_b(params["CBk"]),
                              pack_b(params["CBv"])], axis=-1)   # (L, 1, 2KD+VD)
        args += [cw.astype(jnp.float32), cb.astype(jnp.float32)]
        in_specs += [
            pl.BlockSpec((1, KMAX, 2 * KD + VD), lambda b, s: (s, 0, 0)),
            pl.BlockSpec((1, 1, 2 * KD + VD), lambda b, s: (s, 0, 0)),
        ]
    else:
        KMAX = 1

    kernel = _make_attention_kernel(H, KD, VD, DK, DV, KMAX, use_inc, gating,
                                    _LN_EPS, compute_dtype)

    # TODO(synk): for production sizes on v7x (64 MiB VMEM) the (1, HP, L, L)
    # bias block and the (Lq, Lk) logits should additionally be tiled over an
    # "arbitrary" key grid axis; at the sizes exercised here the per-(b, s)
    # working set is tiny and the bias block is DMA'd only once per batch.
    out = pl.pallas_call(
        kernel,
        out_shape=jax.ShapeDtypeStruct((B, L, L, OD), jnp.float32),
        grid_spec=pltpu.PrefetchScalarGridSpec(
            num_scalar_prefetch=0,
            grid=(B, L),
            in_specs=in_specs,
            out_specs=pl.BlockSpec((1, 1, L, OD), lambda b, s: (b, s, 0, 0))),
        compiler_params=pltpu.CompilerParams(
            dimension_semantics=("parallel", "parallel"),
            vmem_limit_bytes=48 * 1024 * 1024),
    )(*args)

    if orientation == "per_column":
        out = jnp.swapaxes(out, 1, 2)
    return out


# ----------------------------------------------------------------------------
# Pure-JAX reference (faithful port of the PyTorch forward)
# ----------------------------------------------------------------------------
def attention_reference(q_data, k_data, bias, k_mask, params, *, num_head,
                        gating=True, inp_kernels=None):
    Wq, Wk, Wv = params["Wq"], params["Wk"], params["Wv"]
    Wo, bo = params["Wo"], params["bo"]
    B, S, Lq, _ = q_data.shape
    H = num_head
    KD, VD = Wq.shape[1], Wv.shape[1]
    DK, DV = KD // H, VD // H

    q = q_data @ Wq
    k = k_data @ Wk
    v = k_data @ Wv

    def split(t, d):  # 'b s l (h d) -> b s h l d'
        return t.reshape(B, S, -1, H, d).transpose(0, 1, 3, 2, 4)

    q, k, v = split(q, DK), split(k, DK), split(v, DV)

    if inp_kernels is not None:
        nk = len(inp_kernels)
        KMAX = max(inp_kernels)
        P = KMAX // 2
        gn = (S * H) // nk

        def inception(t, W, Bv, d):
            # W[g]: (KMAX, d) zero-padded taps; group 0 is a delta kernel ==
            # the exact identity passthrough of the PyTorch code.
            L = t.shape[3]
            x = t.reshape(B, S * H, L, d)
            outs = []
            for g in range(nk):
                xg = x[:, g * gn:(g + 1) * gn]
                xp = jnp.pad(xg, ((0, 0), (0, 0), (P, P), (0, 0)))
                acc = jnp.zeros_like(xg)
                for j in range(KMAX):
                    acc = acc + xp[:, :, j:j + L, :] * W[g, j][None, None, None, :]
                outs.append(acc + Bv[g][None, None, None, :])
            return jnp.concatenate(outs, axis=1).reshape(B, S, H, L, d)

        q = inception(q, params["CWq"], params["CBq"], DK)
        k = inception(k, params["CWk"], params["CBk"], DK)
        v = inception(v, params["CWv"], params["CBv"], DV)

    q = q * DK ** (-0.5)
    logits = jnp.einsum("bshqd,bshkd->bshqk", q, k,
                        preferred_element_type=jnp.float32)
    logits = logits + bias[:, None]
    mask_value = jnp.finfo(logits.dtype).min / 10000.0
    km = k_mask[:, :, None, None, :]
    logits = jnp.where(km, logits, mask_value)
    weights = jax.nn.softmax(logits, axis=-1)
    wa = jnp.einsum("bshqk,bshkd->bshqd", weights, v,
                    preferred_element_type=jnp.float32)
    wa = wa.transpose(0, 1, 3, 2, 4).reshape(B, S, Lq, VD)
    if gating:
        gate = jax.nn.sigmoid(q_data @ params["Wg"] + params["bg"])
        wa = wa * gate
    return wa @ Wo + bo


def triangle_attention_reference(pair_act, seq_mask, params, *, num_head,
                                 gating=True, inp_kernels=None,
                                 orientation="per_row"):
    if orientation == "per_column":
        pair_act = jnp.swapaxes(pair_act, 1, 2)
    mu = jnp.mean(pair_act, axis=-1, keepdims=True)
    var = jnp.mean((pair_act - mu) ** 2, axis=-1, keepdims=True)
    normed = ((pair_act - mu) / jnp.sqrt(var + _LN_EPS)) * params["gamma"] \
        + params["beta"]
    bias = jnp.einsum("bijc,ch->bhij", normed, params["Wp"])
    B, L = pair_act.shape[:2]
    k_mask = jnp.broadcast_to(seq_mask[:, None, :], (B, L, L))
    out = attention_reference(normed, normed, bias, k_mask, params,
                              num_head=num_head, gating=gating,
                              inp_kernels=inp_kernels)
    if orientation == "per_column":
        out = jnp.swapaxes(out, 1, 2)
    return out


# ----------------------------------------------------------------------------
# Deterministic parameter construction
# ----------------------------------------------------------------------------
def init_params(key, C, H, inp_kernels):
    KD = VD = OD = C
    DK, DV = KD // H, VD // H
    ks = jax.random.split(key, 14)
    p = {
        "gamma": 1.0 + 0.1 * jax.random.normal(ks[11], (C,), jnp.float32),
        "beta": 0.1 * jax.random.normal(ks[12], (C,), jnp.float32),
        "Wp": jax.random.normal(ks[13], (C, H), jnp.float32) * 0.1,
        "Wq": jax.random.normal(ks[0], (C, KD), jnp.float32) * 0.1,
        "Wk": jax.random.normal(ks[1], (C, KD), jnp.float32) * 0.1,
        "Wv": jax.random.normal(ks[2], (C, VD), jnp.float32) * 0.1,
        "Wg": jax.random.normal(ks[3], (C, VD), jnp.float32) * 0.1,
        "bg": jnp.ones((VD,), jnp.float32),      # 'gate' init -> bias ~ 1
        "Wo": jax.random.normal(ks[4], (VD, OD), jnp.float32) * 0.1,
        "bo": jnp.zeros((OD,), jnp.float32),     # 'final' init -> zero bias
    }
    if inp_kernels is not None:
        nk = len(inp_kernels)
        KMAX = max(inp_kernels)

        def build(kw, kb, d):
            W = np.zeros((nk, KMAX, d), np.float32)
            Bv = np.zeros((nk, d), np.float32)
            W[0, KMAX // 2, :] = 1.0   # group 0: identity (kernel_size == 1)
            for i, ksz in enumerate(inp_kernels[1:], start=1):
                off = (KMAX - ksz) // 2
                W[i, off:off + ksz, :] = np.asarray(
                    jax.random.normal(kw[i - 1], (ksz, d), jnp.float32)) * 0.2
                Bv[i, :] = np.asarray(
                    jax.random.normal(kb[i - 1], (d,), jnp.float32)) * 0.1
            return jnp.asarray(W), jnp.asarray(Bv)

        kwq = jax.random.split(ks[5], nk); kbq = jax.random.split(ks[6], nk)
        kwk = jax.random.split(ks[7], nk); kbk = jax.random.split(ks[8], nk)
        kwv = jax.random.split(ks[9], nk); kbv = jax.random.split(ks[10], nk)
        p["CWq"], p["CBq"] = build(kwq, kbq, DK)
        p["CWk"], p["CBk"] = build(kwk, kbk, DK)
        p["CWv"], p["CBv"] = build(kwv, kbv, DV)
    return p


# ----------------------------------------------------------------------------
# Demo / self-check
# ----------------------------------------------------------------------------
if __name__ == "__main__":
    B, L, C, H = 2, 16, 48, 6
    inp_kernels = [1, 3, 5]   # L*H = 96 divisible by len(kernels) = 3

    key = jax.random.PRNGKey(0)
    k1, k2, kp = jax.random.split(key, 3)
    pair_act = jax.random.normal(k1, (B, L, L, C), jnp.float32)
    seq_mask = jax.random.uniform(k2, (B, L)) > 0.2
    seq_mask = seq_mask.at[:, 0].set(True)   # keep at least one valid key

    params = init_params(kp, C, H, inp_kernels)

    with jax.default_matmul_precision("float32"):
        ref_row = triangle_attention_reference(
            pair_act, seq_mask, params, num_head=H, inp_kernels=inp_kernels)
        ref_col = triangle_attention_reference(
            pair_act, seq_mask, params, num_head=H, gating=False,
            inp_kernels=None, orientation="per_column")

    # 1) per_row orientation, inception conv, gated, f32 MXU path.
    out = jax.block_until_ready(triangle_attention_pallas(
        pair_act, seq_mask, params, num_head=H, inp_kernels=inp_kernels,
        compute_dtype=jnp.float32))
    np.testing.assert_allclose(np.asarray(out), np.asarray(ref_row),
                               atol=5e-3, rtol=5e-3)

    # 2) bf16 MXU fast path (v6e/v7x); LN / softmax / gating stay f32.
    out_bf16 = jax.block_until_ready(triangle_attention_pallas(
        pair_act, seq_mask, params, num_head=H, inp_kernels=inp_kernels,
        compute_dtype=jnp.bfloat16))
    np.testing.assert_allclose(np.asarray(out_bf16), np.asarray(ref_row),
                               atol=1e-1, rtol=1e-1)

    # 3) per_column orientation, no inception, no gating.
    out_col = jax.block_until_ready(triangle_attention_pallas(
        pair_act, seq_mask, params, num_head=H, gating=False,
        inp_kernels=None, orientation="per_column",
        compute_dtype=jnp.float32))
    np.testing.assert_allclose(np.asarray(out_col), np.asarray(ref_col),
                               atol=5e-3, rtol=5e-3)

    print("KERNEL_OK")
</pallas_src>

<mosaic_0001>
module attributes {stable_mosaic.version = 11 : i64} {
  func.func @kernel(%arg0: i32, %arg1: i32, %arg2: memref<1x1x16x48xf32, #tpu.memory_space<vmem>>, %arg3: memref<1x48xf32, #tpu.memory_space<vmem>>, %arg4: memref<1x48xf32, #tpu.memory_space<vmem>>, %arg5: memref<48x8xf32, #tpu.memory_space<vmem>>, %arg6: memref<1x1x16x8xf32, #tpu.memory_space<vmem>>) attributes {dimension_semantics = [#tpu.dimension_semantics<parallel>, #tpu.dimension_semantics<parallel>], iteration_bounds = array<i64: 2, 16>, scalar_prefetch = 0 : i64, scratch_operands = 0 : i64, tpu.core_type = #tpu.core_type<tc>, window_params = [{transform_indices = @transform_0, window_bounds = array<i64: 1, 1, 16, 48>}, {pipeline_mode = #tpu.pipeline_mode<synchronous>, transform_indices = @transform_1, window_bounds = array<i64: 1, 48>}, {pipeline_mode = #tpu.pipeline_mode<synchronous>, transform_indices = @transform_2, window_bounds = array<i64: 1, 48>}, {pipeline_mode = #tpu.pipeline_mode<synchronous>, transform_indices = @transform_3, window_bounds = array<i64: 48, 8>}, {transform_indices = @transform_4, window_bounds = array<i64: 1, 1, 16, 8>}]} {
    %c0 = arith.constant 0 : index
    %c0_0 = arith.constant 0 : index
    %c0_1 = arith.constant 0 : index
    %c0_2 = arith.constant 0 : index
    %0 = vector.load %arg2[%c0, %c0_0, %c0_1, %c0_2] : memref<1x1x16x48xf32, #tpu.memory_space<vmem>>, vector<1x1x16x48xf32>
    %1 = vector.shape_cast %0 : vector<1x1x16x48xf32> to vector<16x48xf32>
    %c0_3 = arith.constant 0 : index
    %c0_4 = arith.constant 0 : index
    %2 = vector.load %arg3[%c0_3, %c0_4] : memref<1x48xf32, #tpu.memory_space<vmem>>, vector<1x48xf32>
    %c0_5 = arith.constant 0 : index
    %c0_6 = arith.constant 0 : index
    %3 = vector.load %arg4[%c0_5, %c0_6] : memref<1x48xf32, #tpu.memory_space<vmem>>, vector<1x48xf32>
    %cst = arith.constant dense<0.000000e+00> : vector<16xf32>
    %4 = vector.multi_reduction <add>, %1, %cst [1] : vector<16x48xf32> to vector<16xf32>
    %5 = vector.shape_cast %4 : vector<16xf32> to vector<16x1xf32>
    %cst_7 = arith.constant 4.800000e+01 : f32
    %6 = vector.broadcast %cst_7 : f32 to vector<16x1xf32>
    %7 = arith.divf %5, %6 : vector<16x1xf32>
    %8 = vector.broadcast %7 : vector<16x1xf32> to vector<16x48xf32>
    %9 = arith.subf %1, %8 : vector<16x48xf32>
    %10 = arith.mulf %9, %9 : vector<16x48xf32>
    %cst_8 = arith.constant dense<0.000000e+00> : vector<16xf32>
    %11 = vector.multi_reduction <add>, %10, %cst_8 [1] : vector<16x48xf32> to vector<16xf32>
    %12 = vector.shape_cast %11 : vector<16xf32> to vector<16x1xf32>
    %cst_9 = arith.constant 4.800000e+01 : f32
    %13 = vector.broadcast %cst_9 : f32 to vector<16x1xf32>
    %14 = arith.divf %12, %13 : vector<16x1xf32>
    %cst_10 = arith.constant 9.99999974E-6 : f32
    %15 = vector.broadcast %cst_10 : f32 to vector<16x1xf32>
    %16 = arith.addf %14, %15 : vector<16x1xf32>
    %17 = math.rsqrt %16 : vector<16x1xf32>
    %18 = vector.broadcast %17 : vector<16x1xf32> to vector<16x48xf32>
    %19 = arith.mulf %9, %18 : vector<16x48xf32>
    %20 = vector.broadcast %2 : vector<1x48xf32> to vector<16x48xf32>
    %21 = arith.mulf %19, %20 : vector<16x48xf32>
    %22 = vector.broadcast %3 : vector<1x48xf32> to vector<16x48xf32>
    %23 = arith.addf %21, %22 : vector<16x48xf32>
    %c0_11 = arith.constant 0 : index
    %c0_12 = arith.constant 0 : index
    %24 = vector.load %arg5[%c0_11, %c0_12] : memref<48x8xf32, #tpu.memory_space<vmem>>, vector<48x8xf32>
    %cst_13 = arith.constant dense<0.000000e+00> : vector<16x8xf32>
    %25 = tpu.matmul %23, %24, %cst_13 {dimension_numbers = #tpu.dot_dimension_numbers<[1], [0], [0], [1], [0, 0, 1, 1], [], []>} : vector<16x48xf32>, vector<48x8xf32>, vector<16x8xf32> -> vector<16x8xf32>
    %c0_14 = arith.constant 0 : index
    %c0_15 = arith.constant 0 : index
    %c0_16 = arith.constant 0 : index
    %c0_17 = arith.constant 0 : index
    %26 = vector.load %arg6[%c0_14, %c0_15, %c0_16, %c0_17] : memref<1x1x16x8xf32, #tpu.memory_space<vmem>>, vector<1x1x16x8xf32>
    %27 = vector.shape_cast %26 : vector<1x1x16x8xf32> to vector<16x8xf32>
    %28 = vector.shape_cast %25 : vector<16x8xf32> to vector<1x1x16x8xf32>
    tpu.vector_store %arg6[%c0_14, %c0_15, %c0_16, %c0_17], %28 {strides = array<i32>} : memref<1x1x16x8xf32, #tpu.memory_space<vmem>>, vector<1x1x16x8xf32>,
    return
  }
  func.func @transform_0(%arg0: i32, %arg1: i32) -> (i32, i32, i32, i32) {
    %c0_i32 = arith.constant 0 : i32
    %c0_i32_0 = arith.constant 0 : i32
    %c0_i32_1 = arith.constant 0 : i32
    return %arg0, %arg1, %c0_i32, %c0_i32_0 : i32, i32, i32, i32
  }
  func.func @transform_1(%arg0: i32, %arg1: i32) -> (i32, i32) {
    %c0_i32 = arith.constant 0 : i32
    %c0_i32_0 = arith.constant 0 : i32
    %c0_i32_1 = arith.constant 0 : i32
    return %c0_i32, %c0_i32_0 : i32, i32
  }
  func.func @transform_2(%arg0: i32, %arg1: i32) -> (i32, i32) {
    %c0_i32 = arith.constant 0 : i32
    %c0_i32_0 = arith.constant 0 : i32
    %c0_i32_1 = arith.constant 0 : i32
    return %c0_i32, %c0_i32_0 : i32, i32
  }
  func.func @transform_3(%arg0: i32, %arg1: i32) -> (i32, i32) {
    %c0_i32 = arith.constant 0 : i32
    %c0_i32_0 = arith.constant 0 : i32
    %c0_i32_1 = arith.constant 0 : i32
    return %c0_i32, %c0_i32_0 : i32, i32
  }
  func.func @transform_4(%arg0: i32, %arg1: i32) -> (i32, i32, i32, i32) {
    %c0_i32 = arith.constant 0 : i32
    %c0_i32_0 = arith.constant 0 : i32
    %c0_i32_1 = arith.constant 0 : i32
    return %arg0, %arg1, %c0_i32, %c0_i32_0 : i32, i32, i32, i32
  }
}

</mosaic_0001>

<bundles_post_ra>
// kernel: tpu_custom_call.1
= control target key start
LH: loop header
LB: loop body
LE: loop exit
PB: predicated region body
PF: predicated region fallthrough
CT: control target
= control target key end

     0   :  { %9 = vsyncpa [#allocation3], 0  ;;  %s881_s0 = inlined_call_operand.hbm [shape: f32[2,16,16,48], index: 0, kind: input, shape index: {}]   ;;  %s882_s1 = inlined_call_operand.vmem [shape: f32[1,48], index: 1, kind: input, shape index: {}]   ;;  %s883_s2 = inlined_call_operand.vmem [shape: f32[1,48], index: 2, kind: input, shape index: {}]   ;;  %s884_s3 = inlined_call_operand.vmem [shape: f32[48,8], index: 3, kind: input, shape index: {}]   ;;  %s885_s4 = inlined_call_operand.vmem [shape: f32[2,16,16,8], index: 4, kind: output, shape index: {}]  }
   0x1   :  { %11 = vsyncpa [#allocation3 + $0x1], 0  ;;  %s726_s15 = smov 0   ;;  %s728_s16 = smov 0  }
   0x2   :  { %s730_s17 = smov 0   ;;  %s732_s18 = smov 0  }
   0x3   :  { %s734_s19 = smov 0   ;;  %s736_s20 = smov 0  }
   0x4   :  { %s738_s21 = smov 0   ;;  %s740_s22 = smov 0  }
   0x5 LB: > { %s483_s23 = sadd.s32 4294967295, %s696_s22   ;;  %s26_s24 = sadd.s32 1, %s688_s20  ;;  %s696_s22 = sphi %s740_s22, %s17_s22   ;;  %s692_s21 = sphi %s738_s21, %s898_s21   ;;  %s688_s20 = sphi %s736_s20, %s897_s20   ;;  %s684_s19 = sphi %s734_s19, %s896_s19   ;;  %s680_s18 = sphi %s732_s18, %s895_s18   ;;  %s676_s17 = sphi %s730_s17, %s894_s17   ;;  %s672_s16 = sphi %s728_s16, %s893_s16   ;;  %s668_s15 = sphi %s726_s15, %s892_s15  }
   0x6   : > { %p27_p0 = scmp.ge.s32.totalorder %s26_s24, 16  ;;  %s29_s25 = sadd.s32 1, %s692_s21 }
   0x7   : > { %s38_s26 = sadd.s32 1, %s676_s17  ;;  %p45_p1 = scmp.ne.s32.totalorder %s676_s17, %s672_s16 }
   0x8   : > { %s900_s24 = smov (%p27_p0, %s26_s24), 0  ;;  %s902_s25 = smov (!%p27_p0, %s29_s25), %s692_s21 }
   0x9   : > { %887 = sst [smem:[#allocation5_spill]] %s900_s24  ;;  %s34_s27 = ssub.s32 %s688_s20, %s900_s24 }
   0xa   : > { %p46_p2 = scmp.eq.s32.totalorder %s696_s22, 0  ;;  %p31_p3 = scmp.ge.s32.totalorder %s902_s25, 2 }
   0xb   : > { %p51_p4 = scmp.ne.s32.totalorder %s672_s16, %s668_s15  ;;  %p52_p6 = scmp.eq.s32.totalorder %s483_s23, 0 }
   0xc   : > { %p777_p5 = por %p46_p2, %p45_p1  ;;  %s904_s25 = smov (%p31_p3, %s902_s25), 0 }
   0xd   : > { %p783_p7 = por %p52_p6, %p51_p4  ;;  %s33_s30 = ssub.s32 %s692_s21, %s904_s25 }
   0xe   : > { %p531_p8 = scmp.lt.s32.totalorder %s696_s22, 32  ;;  %s35_s5 = sor.u32 %s34_s27, %s33_s30 }
   0xf   : > { %s175_s6 = sand.u32 1, %s676_s17   ;;  %p36_p9 = scmp.eq.s32.totalorder %s35_s5, 0 }
  0x10   : > { %s487_s7 = sshll.u32 %s175_s6, 4  ;;  %s488_s8 = sshll.u32 %s688_s20, 1 }
  0x11   : > { %s793_s9 = scalar_select %p36_p9, %s676_s17, %s38_s26  }
  0x12   : > { %s489_s10 = sshll.u32 %s692_s21, 5  ;;  %s179_s12 = scalar_lea.vmem [#allocation2], %s487_s7 }
  0x13   : > { %s185_s11 = sadd.s32 %s489_s10, %s488_s8  ;;  %s188_s13 = sshll.u32 %s179_s12, 4  ;;  %s189_s13 = int_to_ptr.vmem [resolvable:$true] %s188_s13 }
  0x14   : > { %s490_s14 = sshll.u32 %s185_s11, 7  ;;  %p803_p10 = pnand %p531_p8, %p777_p5 }
  0x15   : > { %s187_s24 = scalar_lea.hbm %s881_s0, %s490_s14  ;;  %p491_p11 = scmp.ge.s32.totalorder %s696_s22, 1 }
  0x16   : > { %s176_s26 = scalar_lea.sflag [#allocation3], %s175_s6  ;;  %p604_p12 = pneg %p803_p10 }
  0x17   : > { %s615_s30 = scalar_lea.vmem %s189_s13, 256  ;;  %s698_s5 = smov [#allocation2]  }
  0x18   : > { %p616_p13 = scmp.ne.s32.totalorder %s189_s13, %s615_s30  ;;  %s620_s7 = sshll.u32 %s698_s5, 4  ;;  %s621_s7 = int_to_ptr.vmem [resolvable:$false] %s620_s7 }
  0x19   : > { %s622_s8 = scalar_lea.vmem %s621_s7, 512  ;;  %p623_p2 = scmp.lt.s32.totalorder %s189_s13, %s621_s7 }
  0x1a   : > { %p618_p0 = pnand %p616_p13, %p604_p12  ;;  %p624_p3 = scmp.lt.s32.totalorder %s622_s8, %s615_s30 }
  0x1c   : > { %p619_p1 = pneg %p618_p0  ;;  %p625_p4 = por %p624_p3, %p623_p2 }
  0x1e   : > { %p626_p5 = pnand %p625_p4, %p619_p1 }
  0x20   : > { %629 = shalt.err (!%p626_p5)
}
  0x21   : > { %s699_s28 = smov 128   ;;  %s700_s6 = smov 8  }
  0x22   : > { %530 = dma.hbm_to_vmem [thread:$0]  (!%p803_p10), %s187_s24, 256, %s189_s13, %s176_s26, %s699_s28, %s699_s28, %s700_s6  }
  0x23   : > { %p196_p6 = scmp.lt.s32.totalorder %s696_s22, 33 }
  0x25   : > { %p197_p8 = pnand %p491_p11, %p196_p6 }
  0x26   : > { %s202_s10 = sand.u32 (!%p197_p8), 1, %s672_s16  }
  0x27   : > { %200 = sbr.rel (%p197_p8) target bundleno = 554 (0x22a), region = 36  ;;  %s492_s11 = sshll.u32 (!%p197_p8), %s202_s10, 4 }
  0x28   : > { %s203_s12 = scalar_lea.sflag (!%p197_p8), [#allocation3], %s202_s10  ;;  %s206_s14 = scalar_lea.vmem (!%p197_p8), [#allocation2], %s492_s11 }
  0x2c   : > { %663 = dma.done.wait (%p783_p7), %s203_s12, 256  }
  0x2d   : > { %665 = vsyncadd (%p783_p7), %s203_s12, 4294967040  ;;  %vm248_vm0 = vcmask 392192   ;;  %v244_v0 = vld [vmem:[%s206_s14] sm:$0xff]  ;;  %v245_v1 = vld [vmem:[%s206_s14 + $0x8] sm:$0xff]  ;;  %p235_p7 = scmp.lt.s32.totalorder %s684_s19, 1  ;;  %p237_p9 = scmp.lt.s32.totalorder %s680_s18, 15 }
  0x2e   : > { %v249_v2 = vsel %vm248_vm0, %v244_v0, 0.0  ;;  %v252_v3 = vsel %vm248_vm0, %v245_v1, 0.0  ;;  %v297_v14 = vld [vmem:[%s884_s3 + $0x28] sm:$0xff]  ;;  %v296_v15 = vld [vmem:[%s884_s3 + $0x20] sm:$0xff]  ;;  %v295_v16 = vld [vmem:[%s884_s3 + $0x18] sm:$0xff]  ;;  %vm379_vm1 = vcmask 64512  }
  0x2f   : > { %250 = vadd.xlane.f32.xlu0 %v249_v2  ;;  %510 = vmatprep.subr.mxu0 %v297_v14  ;;  %v294_v17 = vld [vmem:[%s884_s3 + $0x10] sm:$0xff]  ;;  %v293_v18 = vld [vmem:[%s884_s3 + $0x8] sm:$0xff]  ;;  %v292_v19 = vld [vmem:[%s884_s3] sm:$0xff]  ;;  %s906_s19 = smov (!%p235_p7, %s684_s19), 1  ;;  %s908_s18 = smov (!%p237_p9, %s680_s18), 15 }
  0x30   : > { %511 = vmatpush3.msra.mxu0 %v297_v14  ;;  %v496_v27 = vld [vmem:[%s882_s1] ss:$0 sm:$0xff]  ;;  %s493_s14 = sshll.u32 %s908_s18, 1  ;;  %s494_s24 = sshll.u32 %s906_s19, 5 }
  0x31   : > { %512 = vmatprep.subr.mxu0 %v296_v15  ;;  %v497_v29 = vld [vmem:[%s883_s2] ss:$0 sm:$0xff]  ;;  %s241_s29 = sadd.s32 %s494_s24, %s493_s14 }
  0x32   : > { %513 = vmatpush3.msra.mxu0 %v296_v15  ;;  %s495_s13 = sshll.u32 %s241_s29, 3 }
  0x33   : > { %253 = vadd.xlane.f32.xlu0 %v252_v3  ;;  %514 = vmatprep.subr.mxu0 %v295_v16  ;;  %s243_s27 = scalar_lea.vmem %s885_s4, %s495_s13 }
  0x34   : > { %515 = vmatpush3.msra.mxu0 %v295_v16 }
  0x35   : > { %516 = vmatprep.subr.mxu0 %v294_v17 }
  0x36   : > { %517 = vmatpush3.msra.mxu0 %v294_v17 }
  0x37   : > { %518 = vmatprep.subr.mxu0 %v293_v18 }
  0x38   : > { %519 = vmatpush3.msra.mxu0 %v293_v18 }
  0x39   : > { %520 = vmatprep.subr.mxu0 %v292_v19 }
  0x3a   : > { %521 = vmatpush3.msra.mxu0 %v292_v19 }
  0xb8   : > { %v251_v4 = vpop.xlane.xlu0 %250 }
  0xb9   : > { %v256_v5 = vmul.f32 0.020833334, %v251_v4 }
  0xbb   : > { %v258_v6 = vsub.f32 %v244_v0, %v256_v5 }
  0xbc   : > { %v254_v7 = vpop.xlane.xlu0 %253 }
  0xbd   : > { %v257_v8 = vmul.f32 0.020833334, %v254_v7  ;;  %v260_v9 = vmul.f32 %v258_v6, %v258_v6 }
  0xbf   : > { %v259_v10 = vsub.f32 %v245_v1, %v257_v8  ;;  %v262_v11 = vsel %vm248_vm0, %v260_v9, 0.0 }
  0xc0   : > { %263 = vadd.xlane.f32.xlu1 %v262_v11 }
  0xc1   : > { %v261_v12 = vmul.f32 %v259_v10, %v259_v10 }
  0xc3   : > { %v265_v13 = vsel %vm248_vm0, %v261_v12, 0.0 }
  0xc4   : > { %266 = vadd.xlane.f32.xlu1 %v265_v13 }
 0x149   : > { %v264_v20 = vpop.xlane.xlu1 %263 }
 0x14a   : > { %v268_v21 = vmul.f32 0.020833334, %v264_v20 }
 0x14c   : > { %v270_v22 = vadd.f32 1e-05, %v268_v21 }
 0x14d   : > { %v267_v23 = vpop.xlane.xlu1 %266 }
 0x14e   : > { %598 = vrsqrt.f32 %v270_v22  ;;  %v269_v24 = vmul.f32 0.020833334, %v267_v23 }
 0x150   : > { %v271_v25 = vadd.f32 1e-05, %v269_v24 }
 0x152   : > { %600 = vrsqrt.f32 %v271_v25 }
 0x15b   : > { %v599_v26 = vpop.eup %598 }
 0x15c   : > { %v274_v28 = vmul.f32 %v599_v26, %v258_v6 }
 0x15e   : > { %v282_v30 = vmul.f32 %v496_v27, %v274_v28 }
 0x15f   : > { %v601_v31 = vpop.eup %600 }
 0x160   : > { %v275_v32 = vmul.f32 %v601_v31, %v259_v10  ;;  %v290_v33 = vadd.f32 %v497_v29, %v282_v30 }
 0x162   : > { %v283_v34 = vmul.f32 %v496_v27, %v275_v32  ;;  %522 = vmatprep.mubr.msk.f32.mxu0 %vm248_vm0, %v290_v33 }
 0x164   : > { %v291_v35 = vadd.f32 %v497_v29, %v283_v34 }
 0x166   : > { %523 = vmatmul.mubr.msk.f32.vlgmr.msra.gmra.mxu0 %vm248_vm0, %v291_v35 }
 0x226   : > { %v524_v36 = vpop.f32.mrf.mxu0 }
 0x227   : > { %381 = vst.msk [vmem:[%s243_s27 + $0x8] sm:$0xff] %vm379_vm1, %v524_v36 }
 0x228   : > { %v370_v37 = vpop.f32.mrf.mxu0 }
 0x229   : > { %380 = vst.msk [vmem:[%s243_s27] sm:$0xff] %vm379_vm1, %v370_v37 }
 0x22a PF: > { %s17_s22 = sadd.s32 1, %s696_s22   ;;  %s891_s26 = sld [smem:[#allocation5_spill]] }
 0x22b   : > { %p14_p10 = scmp.ge.s32.totalorder %s17_s22, 34   ;;  %s892_s15 = smov %s672_s16 }
 0x22c   : > { %s893_s16 = smov %s676_s17  ;;  %s894_s17 = smov %s793_s9 }
 0x22d   : > { %s895_s18 = smov %s688_s20  ;;  %s896_s19 = smov %s692_s21 }
 0x22e   : > { %s898_s21 = smov %s904_s25  ;;  %16 = sbr.rel (!%p14_p10) target bundleno = 5 (0x5), region = 76 }
 0x230   : > { %s897_s20 = smov %s891_s26 }
 0x233   :  { %411 = vsyncpa [#allocation3], 1 }
 0x234   :  { %413 = vsyncpa [#allocation3 + $0x1], 1 }

</bundles_post_ra>
